<compile_context>
chip_gen: v5e
topology: v5e:2x2
jax: 0.10.0
libtpu: 0.0.40
codegen_flags: <defaults>
</compile_context>

<pallas_src>
import functools
import math

import jax
import jax.numpy as jnp
from jax import lax
from jax.experimental import pallas as pl
from jax.experimental.pallas import tpu as pltpu

_VMEM_LIMIT = 48 * 1024 * 1024  # safe on v5e/v6e (128 MiB) and v7x (64 MiB)


def _round_up(x, m):
    return (x + m - 1) // m * m


# ----------------------------------------------------------------------------
# Pallas kernels
# ----------------------------------------------------------------------------

def _linear_kernel(x_ref, w_ref, b_ref, o_ref, *, activation):
    # bf16 MXU operands, f32 accumulate.
    x = x_ref[...].astype(jnp.bfloat16)
    w = w_ref[...].astype(jnp.bfloat16)
    y = jnp.dot(x, w, preferred_element_type=jnp.float32)
    y = y + b_ref[...]
    if activation == "relu":
        y = jnp.maximum(y, 0.0)
    o_ref[...] = y


def pl_linear(x, w, b=None, activation="none"):
    """y = x @ w (+ b) [+ relu], tiled over the flattened row dimension."""
    K = x.shape[-1]
    N = w.shape[1]
    x2 = x.reshape(-1, K)
    M = x2.shape[0]
    tm = min(512, _round_up(M, 8))          # M tile (multiple of 8 sublanes)
    Mp = _round_up(M, tm)
    if Mp != M:
        x2 = jnp.pad(x2, ((0, Mp - M), (0, 0)))
    b2 = jnp.zeros((1, N), jnp.float32) if b is None else b.reshape(1, N)
    out = pl.pallas_call(
        functools.partial(_linear_kernel, activation=activation),
        grid=(Mp // tm,),
        in_specs=[
            pl.BlockSpec((tm, K), lambda i: (i, 0)),
            pl.BlockSpec((K, N), lambda i: (0, 0)),
            pl.BlockSpec((1, N), lambda i: (0, 0)),
        ],
        out_specs=pl.BlockSpec((tm, N), lambda i: (i, 0)),
        out_shape=jax.ShapeDtypeStruct((Mp, N), jnp.float32),
        compiler_params=pltpu.CompilerParams(
            dimension_semantics=("parallel",),
            vmem_limit_bytes=_VMEM_LIMIT),
    )(x2, w, b2)
    if Mp != M:
        out = out[:M]
    return out.reshape(*x.shape[:-1], N)
    # TODO(synk): also tile over N for very large output widths; N<=640 here.


def _enc_mha_kernel(*refs, n_heads, scale, has_bias):
    # Per-head contractions on static (H/n_heads)-wide slices (no 8x full-H
    # masked-matmul waste); softmax normalization uses the EUP reciprocal.
    if has_bias:
        q_ref, k_ref, v_ref, bias_ref, o_ref = refs
    else:
        q_ref, k_ref, v_ref, o_ref = refs
        bias_ref = None
    q = q_ref[0]          # (nq, H)
    k = k_ref[0]          # (nk, H)
    v = v_ref[0]          # (nk, H)
    H = q.shape[-1]
    d = H // n_heads
    dims = (((1,), (1,)), ((), ()))   # contract feature dim of both operands
    heads = []
    for h in range(n_heads):
        sl = slice(h * d, (h + 1) * d)
        qh = q[:, sl].astype(jnp.bfloat16)
        kh = k[:, sl].astype(jnp.bfloat16)
        vh = v[:, sl].astype(jnp.bfloat16)
        s = lax.dot_general(qh, kh, dims, preferred_element_type=jnp.float32) * scale
        if has_bias:
            s = s + bias_ref[0]
        s = s - jnp.max(s, axis=-1, keepdims=True)
        p = jnp.exp(s)
        p = p * pl.reciprocal(jnp.sum(p, axis=-1, keepdims=True), approx=True)
        heads.append(jnp.dot(p.astype(jnp.bfloat16), vh,
                             preferred_element_type=jnp.float32))
    o_ref[0] = jnp.concatenate(heads, axis=-1)


def pl_mha_encoder(q, k, v, bias=None, *, n_heads, scale):
    """Fused multi-head self-attention for the encoder (no zero mask/bias DMA
    when bias is None)."""
    B, nq, H = q.shape
    nk = k.shape[1]
    has_bias = bias is not None
    in_specs = [pl.BlockSpec((1, nq, H), lambda b: (b, 0, 0)),
                pl.BlockSpec((1, nk, H), lambda b: (b, 0, 0)),
                pl.BlockSpec((1, nk, H), lambda b: (b, 0, 0))]
    args = [q, k, v]
    if has_bias:
        in_specs.append(pl.BlockSpec((1, nq, nk), lambda b: (b, 0, 0)))
        args.append(bias)
    return pl.pallas_call(
        functools.partial(_enc_mha_kernel, n_heads=n_heads, scale=scale,
                          has_bias=has_bias),
        grid=(B,),
        in_specs=in_specs,
        out_specs=pl.BlockSpec((1, nq, H), lambda b: (b, 0, 0)),
        out_shape=jax.ShapeDtypeStruct((B, nq, H), jnp.float32),
        compiler_params=pltpu.CompilerParams(
            dimension_semantics=("parallel",),
            vmem_limit_bytes=_VMEM_LIMIT),
    )(*args)
    # TODO(synk): for large n, tile the attention over nk (flash-style) to
    # bound per-block VMEM on v6e/v7x.


def _decoder_step_kernel(clip_ref, x_ref, gk_ref, gv_ref, pk_ref, mask_ref,
                         gqw_ref, gow_ref, saqkv_ref, saow_ref,
                         ffw1_ref, ffb1_ref, ffw2_ref, ffb2_ref, pqw_ref,
                         probs_ref, *, dec_L, n_heads):
    """One full decoder step for one batch element: dec_L x (glimpse MHA +
    self-attn + FF) -> probQ -> clipped-tanh pointer softmax.  Weights stay
    resident in VMEM across the (constant block-index) grid."""
    H = x_ref.shape[-1]
    d = H // n_heads
    g_scale = 1.0 / math.sqrt(d)
    p_scale = 1.0 / math.sqrt(H)
    dims = (((1,), (1,)), ((), ()))

    x = x_ref[0]                                             # (2, H) f32
    mask_add = jnp.where(mask_ref[0] > 0.5, 0.0, -1e9)       # (1, n)

    def matmul(a, w):
        return jnp.dot(a.astype(jnp.bfloat16), w.astype(jnp.bfloat16),
                       preferred_element_type=jnp.float32)

    def mha(q, k, v, add_bias):
        heads = []
        for h in range(n_heads):
            sl = slice(h * d, (h + 1) * d)
            qh = q[:, sl].astype(jnp.bfloat16)
            kh = k[:, sl].astype(jnp.bfloat16)
            vh = v[:, sl].astype(jnp.bfloat16)
            s = lax.dot_general(qh, kh, dims,
                                preferred_element_type=jnp.float32) * g_scale
            if add_bias is not None:
                s = s + add_bias
            s = s - jnp.max(s, axis=-1, keepdims=True)
            p = jnp.exp(s)
            p = p * pl.reciprocal(jnp.sum(p, axis=-1, keepdims=True), approx=True)
            heads.append(jnp.dot(p.astype(jnp.bfloat16), vh,
                                 preferred_element_type=jnp.float32))
        return jnp.concatenate(heads, axis=-1)

    for i in range(dec_L):
        # glimpse attention over the node embeddings (masked)
        gq = matmul(x, gqw_ref[i])                          # (2, H)
        g = mha(gq, gk_ref[i, 0], gv_ref[i, 0], mask_add)
        x = x + matmul(g, gow_ref[i])
        # self-attention over the 2 tokens (fused qkv projection)
        qkv = matmul(x, saqkv_ref[i])                       # (2, 3H)
        sa = mha(qkv[:, :H], qkv[:, H:2 * H], qkv[:, 2 * H:], None)
        x = x + matmul(sa, saow_ref[i])
        # feed-forward with residual
        h1 = jnp.maximum(matmul(x, ffw1_ref[i]) + ffb1_ref[i], 0.0)
        x = x + matmul(h1, ffw2_ref[i]) + ffb2_ref[i]

    # pointer logits from the "cur" token (row 1)
    pq = matmul(x[1:2, :], pqw_ref[...])                     # (1, H)
    u = lax.dot_general(pq.astype(jnp.bfloat16),
                        pk_ref[0].astype(jnp.bfloat16),
                        dims, preferred_element_type=jnp.float32) * p_scale
    u = clip_ref[0] * jnp.tanh(u)
    u = u + mask_add
    u = u - jnp.max(u, axis=-1, keepdims=True)
    e = jnp.exp(u)
    probs_ref[0] = e * pl.reciprocal(jnp.sum(e, axis=-1, keepdims=True),
                                     approx=True)


def decoder_step(clip, des_cur, gk_all, gv_all, prob_key, mask3, dw, *,
                 dec_L, n_heads):
    EB, n, H = prob_key.shape
    FF = dw["ffw1"].shape[-1]
    out = pl.pallas_call(
        functools.partial(_decoder_step_kernel, dec_L=dec_L, n_heads=n_heads),
        grid=(EB,),
        in_specs=[
            pl.BlockSpec(memory_space=pltpu.MemorySpace.SMEM),        # clip
            pl.BlockSpec((1, 2, H), lambda b: (b, 0, 0)),             # des_cur
            pl.BlockSpec((dec_L, 1, n, H), lambda b: (0, b, 0, 0)),   # glimpse K
            pl.BlockSpec((dec_L, 1, n, H), lambda b: (0, b, 0, 0)),   # glimpse V
            pl.BlockSpec((1, n, H), lambda b: (b, 0, 0)),             # prob key
            pl.BlockSpec((1, 1, n), lambda b: (b, 0, 0)),             # mask
            pl.BlockSpec((dec_L, H, H), lambda b: (0, 0, 0)),         # glimpseQ
            pl.BlockSpec((dec_L, H, H), lambda b: (0, 0, 0)),         # glimpseVOut
            pl.BlockSpec((dec_L, H, 3 * H), lambda b: (0, 0, 0)),     # self-attn qkv
            pl.BlockSpec((dec_L, H, H), lambda b: (0, 0, 0)),         # self-attn out
            pl.BlockSpec((dec_L, H, FF), lambda b: (0, 0, 0)),        # ff w1
            pl.BlockSpec((dec_L, 1, FF), lambda b: (0, 0, 0)),        # ff b1
            pl.BlockSpec((dec_L, FF, H), lambda b: (0, 0, 0)),        # ff w2
            pl.BlockSpec((dec_L, 1, H), lambda b: (0, 0, 0)),         # ff b2
            pl.BlockSpec((H, H), lambda b: (0, 0)),                   # probQ
        ],
        out_specs=pl.BlockSpec((1, 1, n), lambda b: (b, 0, 0)),
        out_shape=jax.ShapeDtypeStruct((EB, 1, n), jnp.float32),
        compiler_params=pltpu.CompilerParams(
            dimension_semantics=("parallel",),
            vmem_limit_bytes=_VMEM_LIMIT),
    )(clip, des_cur, gk_all, gv_all, prob_key, mask3,
      dw["gq"], dw["gout"], dw["sa_qkv"], dw["sa_o"],
      dw["ffw1"], dw["ffb1"], dw["ffw2"], dw["ffb2"], dw["pq"])
    return out.reshape(EB, n)
    # TODO(synk): generalize to >1 batch element per grid block (tb>8) with
    # batched in-kernel einsums for very large EB.


# ----------------------------------------------------------------------------
# Model glue
# ----------------------------------------------------------------------------

def batch_norm(x, gamma, beta, eps=1e-5):
    # BatchNorm1d over flattened (B*n, H), training-mode batch statistics.
    B, n, H = x.shape
    xf = x.reshape(B * n, H)
    mean = xf.mean(0, keepdims=True)
    var = ((xf - mean) ** 2).mean(0, keepdims=True)
    y = (xf - mean) / jnp.sqrt(var + eps) * gamma + beta
    return y.reshape(B, n, H)


def encoder_forward(eparams, x, dt_graph, *, n_heads):
    H = eparams["init_w"].shape[1]
    h = pl_linear(x, eparams["init_w"], eparams["init_b"])
    scale = 1.0 / math.sqrt(H // n_heads)
    for layer in eparams["layers"]:
        # fused QKV projection: node embeddings read from HBM once
        qkv = pl_linear(h, layer["wqkv"])
        q, k, v = qkv[..., :H], qkv[..., H:2 * H], qkv[..., 2 * H:]
        attn = pl_mha_encoder(q, k, v, bias=dt_graph, n_heads=n_heads, scale=scale)
        attn = pl_linear(attn, layer["wo"])
        h = batch_norm(h + attn, layer["bn1_g"], layer["bn1_b"])
        ff = pl_linear(h, layer["ff_w1"], layer["ff_b1"], activation="relu")
        ff = pl_linear(ff, layer["ff_w2"], layer["ff_b2"])
        h = batch_norm(h + ff, layer["bn2_g"], layer["bn2_b"])
    return h


def meam_forward(params, x_all, dt_graph=None, decode_type="greedy", rng=None, *, cfg):
    B, n, _ = x_all.shape
    H = cfg["hidden_size"]
    nE, nH, dec_L = cfg["n_encoders"], cfg["n_heads"], cfg["decoder_layers"]
    EB = B * nE
    if cfg.get("topk", 0) > 0:
        # TODO(synk): topk re-masking branch of the reference is not implemented.
        raise NotImplementedError("topk > 0 not supported in this kernel port")
    if decode_type not in ("greedy", "sample"):
        raise NotImplementedError("decode type {} not supported".format(decode_type))

    # ------ encoders ------
    node_list = [encoder_forward(params["encoders"][i], x_all, dt_graph, n_heads=nH)
                 for i in range(nE)]
    node_embeddings = jnp.concatenate(node_list, axis=0)              # (EB, n, H)

    # ------ fused glimpseK / glimpseV / probK projection (read embeddings once) ------
    kvp = pl_linear(node_embeddings, params["w_kvp"])                 # (EB, n, (2L+1)H)
    gk_all = jnp.stack([kvp[..., i * H:(i + 1) * H] for i in range(dec_L)], 0)
    gv_all = jnp.stack([kvp[..., (dec_L + i) * H:(dec_L + i + 1) * H]
                        for i in range(dec_L)], 0)
    prob_key = kvp[..., 2 * dec_L * H:]                               # (EB, n, H)
    # bf16 for the per-step re-read operands (halves HBM traffic in the scan)
    gk_all = gk_all.astype(jnp.bfloat16)
    gv_all = gv_all.astype(jnp.bfloat16)
    prob_key = prob_key.astype(jnp.bfloat16)

    dw = params["decoder"]
    u0_clip = float(cfg["u0_clip"])
    u_clip = float(cfg["u_clip"])
    glimpse_count = n  # decode steps

    mask0 = jnp.ones((EB, n), jnp.float32)
    des_cur0 = jnp.stack([jnp.broadcast_to(params["des_holder"], (EB, H)),
                          jnp.broadcast_to(params["cur_holder"], (EB, H))], axis=1)
    arange_EB = jnp.arange(EB)
    if rng is None:
        rng = jax.random.PRNGKey(0)

    def step_fn(carry, step):
        mask, des_cur, des_idx, first_prob, key = carry
        clip = jnp.where(step == 0, u0_clip, u_clip).astype(jnp.float32).reshape(1)
        probs = decoder_step(clip, des_cur, gk_all, gv_all, prob_key,
                             mask.reshape(EB, 1, n), dw, dec_L=dec_L, n_heads=nH)
        if decode_type == "sample":
            key, sub = jax.random.split(key)
            # masked entries have probability exactly 0 -> never sampled, so the
            # PyTorch rejection-resample loop is unnecessary here.
            idx = jax.random.categorical(sub, jnp.log(probs), axis=-1)
        else:  # greedy
            idx = jnp.argmax(probs, axis=-1)
        idx = idx.astype(jnp.int32)
        chosen_p = probs[arange_EB, idx]
        des_idx = jnp.where(step == 0, idx, des_idx)
        first_prob = jnp.where(step == 0, probs, first_prob)
        des_emb = node_embeddings[arange_EB, des_idx]
        cur_emb = node_embeddings[arange_EB, idx]
        new_des_cur = jnp.stack([des_emb, cur_emb], axis=1)
        new_mask = mask.at[arange_EB, idx].set(0.0)
        return (new_mask, new_des_cur, des_idx, first_prob, key), (idx, chosen_p)

    init = (mask0, des_cur0, jnp.zeros((EB,), jnp.int32),
            jnp.zeros((EB, n), jnp.float32), rng)
    (_, _, _, first_prob, _), (route_steps, prob_steps) = lax.scan(
        step_fn, init, jnp.arange(glimpse_count))

    routes = jnp.transpose(route_steps).reshape(nE, B, n)
    probs_r = jnp.transpose(prob_steps).reshape(nE, B, n)
    first_step_probs = first_prob.reshape(nE, B, n)
    return {"routes": routes, "probs": probs_r, "first_step_prob": first_step_probs}


# ----------------------------------------------------------------------------
# Deterministic parameter initialization (shapes per MEAM.__init__)
# ----------------------------------------------------------------------------

def init_params(key, cfg):
    H = cfg["hidden_size"]
    FF = 4 * H
    dL = cfg["decoder_layers"]
    keys = list(jax.random.split(key, 1024))
    kit = iter(keys)

    def nk():
        return next(kit)

    def lin(*shape):
        return jax.random.normal(nk(), shape, jnp.float32) * 0.05

    def vec(*shape):
        return jax.random.normal(nk(), shape, jnp.float32) * 0.05

    params = {}
    encoders = []
    for _ in range(cfg["n_encoders"]):
        layers = []
        for _ in range(cfg["encoder_layers"]):
            layers.append(dict(
                wqkv=lin(H, 3 * H), wo=lin(H, H),
                bn1_g=jnp.ones((H,), jnp.float32), bn1_b=jnp.zeros((H,), jnp.float32),
                ff_w1=lin(H, FF), ff_b1=vec(FF), ff_w2=lin(FF, H), ff_b2=vec(H),
                bn2_g=jnp.ones((H,), jnp.float32), bn2_b=jnp.zeros((H,), jnp.float32),
            ))
        encoders.append(dict(init_w=lin(2, H), init_b=vec(H), layers=layers))
    params["encoders"] = encoders

    params["cur_holder"] = jax.random.uniform(nk(), (H,), jnp.float32, -1.0, 1.0)
    params["des_holder"] = jax.random.uniform(nk(), (H,), jnp.float32, -1.0, 1.0)

    # fused [glimpseK_0..L-1 | glimpseV_0..L-1 | probK] projection weight
    params["w_kvp"] = lin(H, (2 * dL + 1) * H)

    # decoder weights, stacked over layers; matmul operands kept in bf16
    params["decoder"] = dict(
        gq=lin(dL, H, H).astype(jnp.bfloat16),
        gout=lin(dL, H, H).astype(jnp.bfloat16),
        sa_qkv=lin(dL, H, 3 * H).astype(jnp.bfloat16),
        sa_o=lin(dL, H, H).astype(jnp.bfloat16),
        ffw1=lin(dL, H, FF).astype(jnp.bfloat16),
        ffb1=vec(dL, 1, FF),
        ffw2=lin(dL, FF, H).astype(jnp.bfloat16),
        ffb2=vec(dL, 1, H),
        pq=lin(H, H).astype(jnp.bfloat16),
    )
    return params


# ----------------------------------------------------------------------------

if __name__ == "__main__":
    cfg = dict(hidden_size=128, encoder_layers=2, decoder_layers=2,
               u0_clip=10, u_clip=10, n_heads=8, n_encoders=2, topk=0, need_dt=True)

    key = jax.random.PRNGKey(0)
    pkey, xkey = jax.random.split(key, 2)
    params = init_params(pkey, cfg)

    B, n = 2, 8
    x_all = jax.random.uniform(xkey, (B, n, 2), jnp.float32)          # B * n * 2 coords
    diff = x_all[:, :, None, :] - x_all[:, None, :, :]
    dt_graph = jnp.sqrt(jnp.sum(diff ** 2, axis=-1) + 1e-9)           # B * n * n

    out = meam_forward(params, x_all, dt_graph, decode_type="greedy", cfg=cfg)
    jax.block_until_ready(out["routes"])
    jax.block_until_ready(out["probs"])
    jax.block_until_ready(out["first_step_prob"])
    print("KERNEL_OK")
</pallas_src>

<mosaic_0001>
module attributes {stable_mosaic.version = 11 : i64} {
  func.func @_linear_kernel(%arg0: i32, %arg1: memref<16x2xf32, #tpu.memory_space<vmem>>, %arg2: memref<2x128xf32, #tpu.memory_space<vmem>>, %arg3: memref<1x128xf32, #tpu.memory_space<vmem>>, %arg4: memref<16x128xf32, #tpu.memory_space<vmem>>) attributes {dimension_semantics = [#tpu.dimension_semantics<parallel>], iteration_bounds = array<i64: 1>, scalar_prefetch = 0 : i64, scratch_operands = 0 : i64, tpu.core_type = #tpu.core_type<tc>, window_params = [{transform_indices = @transform_0, window_bounds = array<i64: 16, 2>}, {pipeline_mode = #tpu.pipeline_mode<synchronous>, transform_indices = @transform_1, window_bounds = array<i64: 2, 128>}, {pipeline_mode = #tpu.pipeline_mode<synchronous>, transform_indices = @transform_2, window_bounds = array<i64: 1, 128>}, {transform_indices = @transform_3, window_bounds = array<i64: 16, 128>}]} {
    %c0 = arith.constant 0 : index
    %c0_0 = arith.constant 0 : index
    %0 = vector.load %arg1[%c0, %c0_0] : memref<16x2xf32, #tpu.memory_space<vmem>>, vector<16x2xf32>
    %1 = arith.truncf %0 : vector<16x2xf32> to vector<16x2xbf16>
    %c0_1 = arith.constant 0 : index
    %c0_2 = arith.constant 0 : index
    %2 = vector.load %arg2[%c0_1, %c0_2] : memref<2x128xf32, #tpu.memory_space<vmem>>, vector<2x128xf32>
    %3 = arith.truncf %2 : vector<2x128xf32> to vector<2x128xbf16>
    %cst = arith.constant dense<0.000000e+00> : vector<16x128xf32>
    %4 = tpu.matmul %1, %3, %cst {dimension_numbers = #tpu.dot_dimension_numbers<[1], [0], [0], [1], [0, 0, 1, 1], [], []>} : vector<16x2xbf16>, vector<2x128xbf16>, vector<16x128xf32> -> vector<16x128xf32>
    %c0_3 = arith.constant 0 : index
    %c0_4 = arith.constant 0 : index
    %5 = vector.load %arg3[%c0_3, %c0_4] : memref<1x128xf32, #tpu.memory_space<vmem>>, vector<1x128xf32>
    %6 = vector.broadcast %5 : vector<1x128xf32> to vector<16x128xf32>
    %7 = arith.addf %4, %6 : vector<16x128xf32>
    %c0_5 = arith.constant 0 : index
    %c0_6 = arith.constant 0 : index
    %8 = vector.load %arg4[%c0_5, %c0_6] : memref<16x128xf32, #tpu.memory_space<vmem>>, vector<16x128xf32>
    tpu.vector_store %arg4[%c0_5, %c0_6], %7 {strides = array<i32>} : memref<16x128xf32, #tpu.memory_space<vmem>>, vector<16x128xf32>,
    return
  }
  func.func @transform_0(%arg0: i32) -> (i32, i32) {
    %c0_i32 = arith.constant 0 : i32
    %c0_i32_0 = arith.constant 0 : i32
    return %arg0, %c0_i32 : i32, i32
  }
  func.func @transform_1(%arg0: i32) -> (i32, i32) {
    %c0_i32 = arith.constant 0 : i32
    %c0_i32_0 = arith.constant 0 : i32
    %c0_i32_1 = arith.constant 0 : i32
    return %c0_i32, %c0_i32_0 : i32, i32
  }
  func.func @transform_2(%arg0: i32) -> (i32, i32) {
    %c0_i32 = arith.constant 0 : i32
    %c0_i32_0 = arith.constant 0 : i32
    %c0_i32_1 = arith.constant 0 : i32
    return %c0_i32, %c0_i32_0 : i32, i32
  }
  func.func @transform_3(%arg0: i32) -> (i32, i32) {
    %c0_i32 = arith.constant 0 : i32
    %c0_i32_0 = arith.constant 0 : i32
    return %arg0, %c0_i32 : i32, i32
  }
}

</mosaic_0001>

<bundles_post_ra>
// kernel: tpu_custom_call.1
= control target key start
LH: loop header
LB: loop body
LE: loop exit
PB: predicated region body
PF: predicated region fallthrough
CT: control target
= control target key end

     0   :  { %vm29_vm0 = vcmask 1040384   ;;  %s136_s0 = inlined_call_operand.vmem [shape: f32[16,2], index: 0, kind: input, shape index: {}]   ;;  %s137_s1 = inlined_call_operand.vmem [shape: f32[2,128], index: 1, kind: input, shape index: {}]   ;;  %s138_s2 = inlined_call_operand.vmem [shape: f32[1,128], index: 2, kind: input, shape index: {}]   ;;  %s139_s3 = inlined_call_operand.hbm [shape: f32[16,128], index: 3, kind: output, shape index: {}]  }
   0x1   :  { %v19_v0 = vld [vmem:[%s137_s1] sm:$0x3]  ;;  %v17_v2 = vld [vmem:[%s136_s0 + $0x8] sm:$0xff] }
   0x2   :  { %v16_v1 = vld [vmem:[%s136_s0] sm:$0xff]  ;;  %v20_v3 = vpack.c.bf16 %v19_v0, %v19_v0 }
   0x3   :  { %8 = vsyncpa [#allocation3], 0  ;;  %v18_v5 = vpack.c.bf16 %v17_v2, %v16_v1  ;;  %vm25_vm1 = vcmask 15360   ;;  %v71_v6 = vld [vmem:[%s138_s2] ss:$0 sm:$0xff]  ;;  %s98_s1 = smov [#allocation2]  }
   0x4   :  { %v31_v4 = vsel %vm29_vm0, %v20_v3, 0  ;;  %s53_s20 = sshll.u32 %s98_s1, 4  ;;  %s55_s0 = sshll.u32 %s139_s3, 4  ;;  %s54_s20 = int_to_ptr.vmem [resolvable:$true] %s53_s20  ;;  %s56_s0 = int_to_ptr.hbm [resolvable:$true] %s55_s0 }
   0x5   :  { %40 = vmatpush.bf16.msra.mxu0 %v31_v4  ;;  %s99_s23 = smov 128   ;;  %s100_s24 = smov 8  }
   0x8   :  { %67 = vmatmul.msk.bf16.vlgmr.msra.gmra.mxu0 %vm25_vm1, %v18_v5 }
  0x85   :  { %v42_v7 = vpop.f32.mrf.mxu0 }
  0x86   :  { %v43_v8 = vadd.f32 %v71_v6, %v42_v7 }
  0x88   :  { %47 = vst [vmem:[#allocation2] sm:$0xff] %v43_v8 }
  0x8d   :  { %v44_v9 = vpop.f32.mrf.mxu0 }
  0x8e   :  { %v45_v10 = vadd.f32 %v71_v6, %v44_v9 }
  0x90   :  { %48 = vst [vmem:[#allocation2 + $0x8] sm:$0xff] %v45_v10 }
  0x91   :  { %61 = dma.vmem_to_hbm [thread:$0]  %s54_s20, 256, %s56_s0, [#allocation3], %s99_s23, %s99_s23, %s100_s24  }
  0x92   :  { %96 = dma.done.wait [#allocation3], 256  }
  0x93   :  { %97 = vsyncadd [#allocation3], 4294967040 }
  0x94   :  { %66 = vsyncpa [#allocation3], 1 }

</bundles_post_ra>
